<compile_context>
chip_gen: v5e
topology: v5e:2x2
jax: 0.10.0
libtpu: 0.0.40
codegen_flags: <defaults>
</compile_context>

<pallas_src>
import functools

import jax
import jax.numpy as jnp
from jax import lax
from jax.experimental import pallas as pl
from jax.experimental.pallas import tpu as pltpu

EPS = 1e-5
_TM_CANDIDATES = (1024, 512, 256, 128, 64, 32, 16, 8)
_TN_CANDIDATES = (2048, 1024, 512, 256, 128)


def _round_up(n, m):
    return (n + m - 1) // m * m


@functools.lru_cache(maxsize=None)
def _vmem_budgets():
    """(working-set budget, scoped-vmem limit) derived from this chip's VMEM.

    v7x (64 MiB/TC)  -> limit ~48 MiB, budget ~36 MiB.
    v5e/v6e (128 MiB)-> limit ~96 MiB, budget ~72 MiB.
    """
    try:
        cap = int(pltpu.get_tpu_info().vmem_capacity_bytes)
    except Exception:  # interpret mode / query unavailable: assume smallest (v7x)
        cap = 64 << 20
    cap = max(cap, 48 << 20)
    limit = max(32 << 20, min(int(cap * 0.75), cap - (16 << 20)))
    budget = int(limit * 0.75)
    return budget, limit


def _compiler_params(n_parallel_axes):
    _, limit = _vmem_budgets()
    return pltpu.CompilerParams(
        dimension_semantics=("parallel",) * n_parallel_axes,
        vmem_limit_bytes=limit,
    )


def _pick_tm(r, row_in_bytes, row_out_bytes, fixed_bytes):
    """Largest row tile (multiple of 8) whose double-buffered working set fits."""
    budget, _ = _vmem_budgets()
    tm = 8
    for cand in _TM_CANDIDATES:
        if fixed_bytes + 2 * cand * (row_in_bytes + row_out_bytes) <= budget:
            tm = cand
            break
    return min(tm, max(8, _round_up(r, 8)))


# --------------------------- standalone LayerNorm ----------------------------
def _layernorm_kernel(x_ref, g_ref, b_ref, o_ref):
    x = x_ref[...].astype(jnp.float32)                      # (tm, D)
    mean = jnp.mean(x, axis=-1, keepdims=True)
    centered = x - mean
    var = jnp.mean(centered * centered, axis=-1, keepdims=True)
    y = centered * lax.rsqrt(var + EPS)
    y = y * g_ref[...].astype(jnp.float32) + b_ref[...].astype(jnp.float32)
    o_ref[...] = y.astype(o_ref.dtype)


def layernorm(x2d, gamma, beta, *, tm=None):
    """x2d: (R, D) rows normalized along D. gamma/beta: (D,). No row padding."""
    R, D = x2d.shape
    if tm is None:
        fixed = 2 * 2 * D * 4                               # gamma+beta, double-buffered
        tm = _pick_tm(R, D * 4, D * 4, fixed)
    return pl.pallas_call(
        _layernorm_kernel,
        out_shape=jax.ShapeDtypeStruct((R, D), x2d.dtype),
        grid_spec=pltpu.PrefetchScalarGridSpec(
            num_scalar_prefetch=0,
            grid=(pl.cdiv(R, tm),),                          # ragged last block is fine
            in_specs=[
                pl.BlockSpec((tm, D), lambda i: (i, 0)),     # activation rows
                pl.BlockSpec((1, D), lambda i: (0, 0)),      # gamma, resident
                pl.BlockSpec((1, D), lambda i: (0, 0)),      # beta, resident
            ],
            out_specs=pl.BlockSpec((tm, D), lambda i: (i, 0)),
        ),
        compiler_params=_compiler_params(1),
    )(x2d, gamma.reshape(1, D), beta.reshape(1, D))


# ----------------------- fused PreNorm + Linear kernels -----------------------
def _prenorm_linear_kernel(x_ref, g_ref, b_ref, w_ref, bias_ref, o_ref):
    # LayerNorm on the (tm, D) row tile, in f32 ...
    x = x_ref[...].astype(jnp.float32)
    mean = jnp.mean(x, axis=-1, keepdims=True)
    centered = x - mean
    var = jnp.mean(centered * centered, axis=-1, keepdims=True)
    y = centered * lax.rsqrt(var + EPS)
    y = y * g_ref[...].astype(jnp.float32) + b_ref[...].astype(jnp.float32)
    # ... then feed the MXU directly (bf16 operands, f32 accumulate).
    acc = jnp.dot(y.astype(w_ref.dtype), w_ref[...],
                  preferred_element_type=jnp.float32)
    acc = acc + bias_ref[...].astype(jnp.float32)
    o_ref[...] = acc.astype(o_ref.dtype)


def _linear_kernel(x_ref, w_ref, b_ref, o_ref):
    acc = jnp.dot(x_ref[...].astype(w_ref.dtype), w_ref[...],
                  preferred_element_type=jnp.float32)
    o_ref[...] = (acc + b_ref[...].astype(jnp.float32)).astype(o_ref.dtype)


def _call_rowwise_matmul(kernel, x2d, d_params, w, bias, *, tm=None, tn=None):
    """Shared launcher for row-wise (optionally pre-normed) matmuls.

    kernel signature: (x_tile, *d_param_tiles, w_tile, bias_tile, out_tile).
    Path A: W fully resident, 1-D row grid (small/medium D*Dout).
    Path B: Dout-tiled W, 2-D (rows, dout) grid (large D*Dout fallback).
    Double-buffering of every input (Pallas default) is counted in the budget.
    """
    R, D = x2d.shape
    Dout = w.shape[1]
    wsize = w.dtype.itemsize
    budget, _ = _vmem_budgets()
    n_dp = len(d_params)
    resident_fixed = 2 * (D * Dout * wsize + (n_dp * D + Dout) * 4)

    args = [x2d] + [p.reshape(1, D) for p in d_params] + [w, bias.reshape(1, Dout)]

    if tn is None and resident_fixed + 2 * 8 * (D + Dout) * 4 <= budget:
        # ---- Path A: resident W ----
        if tm is None:
            tm = _pick_tm(R, D * 4, Dout * 4, resident_fixed)
        grid = (pl.cdiv(R, tm),)
        in_specs = (
            [pl.BlockSpec((tm, D), lambda i: (i, 0))]
            + [pl.BlockSpec((1, D), lambda i: (0, 0))] * n_dp
            + [pl.BlockSpec((D, Dout), lambda i: (0, 0)),     # W, resident
               pl.BlockSpec((1, Dout), lambda i: (0, 0))]     # bias, resident
        )
        out_specs = pl.BlockSpec((tm, Dout), lambda i: (i, 0))
    else:
        # ---- Path B: Dout-tiled W ----
        if tn is None:
            tn = 128
            for cand in _TN_CANDIDATES:
                need = 2 * (D * cand * wsize + (n_dp * D + cand) * 4) \
                       + 2 * 8 * (D + cand) * 4
                if cand <= Dout and need <= budget:
                    tn = cand
                    break
        tn = min(tn, max(128, _round_up(Dout, 128)))
        if tm is None:
            fixed = 2 * (D * tn * wsize + (n_dp * D + tn) * 4)
            tm = _pick_tm(R, D * 4, tn * 4, fixed)
        grid = (pl.cdiv(R, tm), pl.cdiv(Dout, tn))
        # x block index is constant across j -> stays resident (no re-DMA per j);
        # the (cheap, VPU) LayerNorm is recomputed per Dout tile instead of
        # caching, keeping the kernel valid under megacore axis sharding.
        in_specs = (
            [pl.BlockSpec((tm, D), lambda i, j: (i, 0))]
            + [pl.BlockSpec((1, D), lambda i, j: (0, 0))] * n_dp
            + [pl.BlockSpec((D, tn), lambda i, j: (0, j)),
               pl.BlockSpec((1, tn), lambda i, j: (0, j))]
        )
        out_specs = pl.BlockSpec((tm, tn), lambda i, j: (i, j))

    return pl.pallas_call(
        kernel,
        out_shape=jax.ShapeDtypeStruct((R, Dout), x2d.dtype),
        grid_spec=pltpu.PrefetchScalarGridSpec(
            num_scalar_prefetch=0,
            grid=grid,
            in_specs=in_specs,
            out_specs=out_specs,
        ),
        compiler_params=_compiler_params(len(grid)),
    )(*args)


def prenorm_linear(x2d, gamma, beta, w, bias, *, tm=None, tn=None):
    """Fused LayerNorm(x2d) @ w + bias (no HBM round-trip of the normed rows)."""
    return _call_rowwise_matmul(_prenorm_linear_kernel, x2d, (gamma, beta), w, bias,
                                tm=tm, tn=tn)


def linear(x2d, w, bias, *, tm=None, tn=None):
    """Row-tiled x2d @ w + bias."""
    return _call_rowwise_matmul(_linear_kernel, x2d, (), w, bias, tm=tm, tn=tn)


# ---------------------------------- PreNorm -----------------------------------
class PallasLinear:
    """Linear(dim_in, dim_out) as a Pallas kernel.

    Weight is stored in bf16 (f32 accumulate in-kernel); the output dim is
    padded to a multiple of 128 once at setup time so kernel stores stay
    lane-dense, and the pad is sliced off on return.
    """

    def __init__(self, w, b, *, matmul_dtype=jnp.bfloat16):
        dout = w.shape[1]
        pad = (-dout) % 128
        if pad:
            w = jnp.pad(w, ((0, 0), (0, pad)))
            b = jnp.pad(b, ((0, pad),))
        self.dout = dout
        self.w = w.astype(matmul_dtype)
        self.b = b.astype(jnp.float32)

    def __call__(self, y):
        B, S, D = y.shape
        out = linear(y.reshape(B * S, D), self.w, self.b)
        if out.shape[1] != self.dout:
            out = out[:, : self.dout]
        return out.reshape(B, S, self.dout)


class PreNorm:
    """x -> fn(LayerNorm(x), **kwargs).

    If `fn` is a PallasLinear (and no kwargs), the whole PreNorm+Linear path
    runs as one fused Pallas kernel; otherwise LayerNorm runs as its own
    Pallas kernel and the arbitrary `fn` is applied to the result.
    """

    def __init__(self, dim, fn, gamma=None, beta=None):
        self.dim = dim
        self.fn = fn
        # PyTorch nn.LayerNorm default init: weight=1, bias=0.
        self.gamma = jnp.ones((dim,), jnp.float32) if gamma is None else gamma
        self.beta = jnp.zeros((dim,), jnp.float32) if beta is None else beta

    def __call__(self, x, **kwargs):
        B, S, D = x.shape
        assert D == self.dim
        x2d = x.reshape(B * S, D)
        if isinstance(self.fn, PallasLinear) and not kwargs:
            out2d = prenorm_linear(x2d, self.gamma, self.beta, self.fn.w, self.fn.b)
            if out2d.shape[1] != self.fn.dout:
                out2d = out2d[:, : self.fn.dout]
            return out2d.reshape(B, S, self.fn.dout)
        # TODO(synk): arbitrary `fn` cannot be fused into the kernel; only the
        # LayerNorm runs in Pallas here.
        normed = layernorm(x2d, self.gamma, self.beta).reshape(B, S, D)
        return self.fn(normed, **kwargs)


if __name__ == "__main__":
    B, S, D = 2, 8, 128  # batch, seq, hidden (dim passed to nn.LayerNorm)

    key = jax.random.PRNGKey(0)
    kx, kw, kb, kg, kbe, kw2, kb2 = jax.random.split(key, 7)

    x = jax.random.normal(kx, (B, S, D), dtype=jnp.float32)

    # LayerNorm affine params (non-trivial to exercise the affine path).
    gamma = 1.0 + 0.1 * jax.random.normal(kg, (D,), dtype=jnp.float32)
    beta = 0.1 * jax.random.normal(kbe, (D,), dtype=jnp.float32)

    # Wrapped fn: Linear(dim, dim) — fused with LayerNorm in one kernel (bf16 MXU).
    w = jax.random.normal(kw, (D, D), dtype=jnp.float32) * 0.02
    b = jax.random.normal(kb, (D,), dtype=jnp.float32) * 0.01
    fn = PallasLinear(w, b)

    prenorm = PreNorm(D, fn, gamma, beta)
    out = jax.block_until_ready(prenorm(x))

    # Pure-JAX f32 reference.
    mean = jnp.mean(x, axis=-1, keepdims=True)
    var = jnp.mean((x - mean) ** 2, axis=-1, keepdims=True)
    normed_ref = (x - mean) * lax.rsqrt(var + EPS) * gamma + beta
    ref = jnp.einsum("bsd,de->bse", normed_ref, w) + b

    assert out.shape == (B, S, D)
    # bf16 MXU operands -> slightly looser tolerance than pure-f32 parity.
    assert jnp.allclose(out, ref, atol=2e-2, rtol=2e-2)

    # Generic (non-fused) path: standalone LayerNorm kernel + arbitrary fn (f32).
    prenorm_generic = PreNorm(D, lambda y: y * 2.0, gamma, beta)
    out2 = jax.block_until_ready(prenorm_generic(x))
    assert jnp.allclose(out2, normed_ref * 2.0, atol=1e-3, rtol=1e-3)

    # Standalone PallasLinear (bf16) applied to an already-normed input.
    out_lin = jax.block_until_ready(fn(normed_ref))
    assert jnp.allclose(out_lin, ref, atol=2e-2, rtol=2e-2)

    # Ragged last row tile (R not a multiple of tm) — no wrapper padding.
    Rr = 20
    xr = jax.random.normal(kx, (Rr, D), dtype=jnp.float32)
    ln_r = jax.block_until_ready(layernorm(xr, gamma, beta, tm=16))
    mr = jnp.mean(xr, axis=-1, keepdims=True)
    vr = jnp.mean((xr - mr) ** 2, axis=-1, keepdims=True)
    ln_ref = (xr - mr) * lax.rsqrt(vr + EPS) * gamma + beta
    assert jnp.allclose(ln_r, ln_ref, atol=1e-3, rtol=1e-3)

    # Dout-tiled fallback path (2-D grid) forced via tn, plus ragged rows.
    Dout2 = 256
    w2 = (jax.random.normal(kw2, (D, Dout2), dtype=jnp.float32) * 0.02
          ).astype(jnp.bfloat16)
    b2 = jax.random.normal(kb2, (Dout2,), dtype=jnp.float32) * 0.01
    out3 = jax.block_until_ready(
        prenorm_linear(xr, gamma, beta, w2, b2, tm=16, tn=128))
    ref3 = ln_ref @ w2.astype(jnp.float32) + b2
    assert out3.shape == (Rr, Dout2)
    assert jnp.allclose(out3, ref3, atol=2e-2, rtol=2e-2)

    print("KERNEL_OK")
</pallas_src>

<mosaic_0001>
module attributes {stable_mosaic.version = 11 : i64} {
  func.func @_prenorm_linear_kernel(%arg0: i32, %arg1: memref<16x128xf32, #tpu.memory_space<vmem>>, %arg2: memref<1x128xf32, #tpu.memory_space<vmem>>, %arg3: memref<1x128xf32, #tpu.memory_space<vmem>>, %arg4: memref<128x128xbf16, #tpu.memory_space<vmem>>, %arg5: memref<1x128xf32, #tpu.memory_space<vmem>>, %arg6: memref<16x128xf32, #tpu.memory_space<vmem>>) attributes {dimension_semantics = [#tpu.dimension_semantics<parallel>], iteration_bounds = array<i64: 1>, scalar_prefetch = 0 : i64, scratch_operands = 0 : i64, tpu.core_type = #tpu.core_type<tc>, window_params = [{transform_indices = @transform_0, window_bounds = array<i64: 16, 128>}, {pipeline_mode = #tpu.pipeline_mode<synchronous>, transform_indices = @transform_1, window_bounds = array<i64: 1, 128>}, {pipeline_mode = #tpu.pipeline_mode<synchronous>, transform_indices = @transform_2, window_bounds = array<i64: 1, 128>}, {pipeline_mode = #tpu.pipeline_mode<synchronous>, transform_indices = @transform_3, window_bounds = array<i64: 128, 128>}, {pipeline_mode = #tpu.pipeline_mode<synchronous>, transform_indices = @transform_4, window_bounds = array<i64: 1, 128>}, {transform_indices = @transform_5, window_bounds = array<i64: 16, 128>}]} {
    %c0 = arith.constant 0 : index
    %c0_0 = arith.constant 0 : index
    %0 = vector.load %arg1[%c0, %c0_0] : memref<16x128xf32, #tpu.memory_space<vmem>>, vector<16x128xf32>
    %cst = arith.constant dense<0.000000e+00> : vector<16xf32>
    %1 = vector.multi_reduction <add>, %0, %cst [1] : vector<16x128xf32> to vector<16xf32>
    %2 = vector.shape_cast %1 : vector<16xf32> to vector<16x1xf32>
    %cst_1 = arith.constant 1.280000e+02 : f32
    %3 = vector.broadcast %cst_1 : f32 to vector<16x1xf32>
    %4 = arith.divf %2, %3 : vector<16x1xf32>
    %5 = vector.broadcast %4 : vector<16x1xf32> to vector<16x128xf32>
    %6 = arith.subf %0, %5 : vector<16x128xf32>
    %7 = arith.mulf %6, %6 : vector<16x128xf32>
    %cst_2 = arith.constant dense<0.000000e+00> : vector<16xf32>
    %8 = vector.multi_reduction <add>, %7, %cst_2 [1] : vector<16x128xf32> to vector<16xf32>
    %9 = vector.shape_cast %8 : vector<16xf32> to vector<16x1xf32>
    %cst_3 = arith.constant 1.280000e+02 : f32
    %10 = vector.broadcast %cst_3 : f32 to vector<16x1xf32>
    %11 = arith.divf %9, %10 : vector<16x1xf32>
    %cst_4 = arith.constant 9.99999974E-6 : f32
    %12 = vector.broadcast %cst_4 : f32 to vector<16x1xf32>
    %13 = arith.addf %11, %12 : vector<16x1xf32>
    %14 = math.rsqrt %13 : vector<16x1xf32>
    %15 = vector.broadcast %14 : vector<16x1xf32> to vector<16x128xf32>
    %16 = arith.mulf %6, %15 : vector<16x128xf32>
    %c0_5 = arith.constant 0 : index
    %c0_6 = arith.constant 0 : index
    %17 = vector.load %arg2[%c0_5, %c0_6] : memref<1x128xf32, #tpu.memory_space<vmem>>, vector<1x128xf32>
    %18 = vector.broadcast %17 : vector<1x128xf32> to vector<16x128xf32>
    %19 = arith.mulf %16, %18 : vector<16x128xf32>
    %c0_7 = arith.constant 0 : index
    %c0_8 = arith.constant 0 : index
    %20 = vector.load %arg3[%c0_7, %c0_8] : memref<1x128xf32, #tpu.memory_space<vmem>>, vector<1x128xf32>
    %21 = vector.broadcast %20 : vector<1x128xf32> to vector<16x128xf32>
    %22 = arith.addf %19, %21 : vector<16x128xf32>
    %23 = arith.truncf %22 : vector<16x128xf32> to vector<16x128xbf16>
    %c0_9 = arith.constant 0 : index
    %c0_10 = arith.constant 0 : index
    %24 = vector.load %arg4[%c0_9, %c0_10] : memref<128x128xbf16, #tpu.memory_space<vmem>>, vector<128x128xbf16>
    %cst_11 = arith.constant dense<0.000000e+00> : vector<16x128xf32>
    %25 = tpu.matmul %23, %24, %cst_11 {dimension_numbers = #tpu.dot_dimension_numbers<[1], [0], [0], [1], [0, 0, 1, 1], [], []>} : vector<16x128xbf16>, vector<128x128xbf16>, vector<16x128xf32> -> vector<16x128xf32>
    %c0_12 = arith.constant 0 : index
    %c0_13 = arith.constant 0 : index
    %26 = vector.load %arg5[%c0_12, %c0_13] : memref<1x128xf32, #tpu.memory_space<vmem>>, vector<1x128xf32>
    %27 = vector.broadcast %26 : vector<1x128xf32> to vector<16x128xf32>
    %28 = arith.addf %25, %27 : vector<16x128xf32>
    %c0_14 = arith.constant 0 : index
    %c0_15 = arith.constant 0 : index
    %29 = vector.load %arg6[%c0_14, %c0_15] : memref<16x128xf32, #tpu.memory_space<vmem>>, vector<16x128xf32>
    tpu.vector_store %arg6[%c0_14, %c0_15], %28 {strides = array<i32>} : memref<16x128xf32, #tpu.memory_space<vmem>>, vector<16x128xf32>,
    return
  }
  func.func @transform_0(%arg0: i32) -> (i32, i32) {
    %c0_i32 = arith.constant 0 : i32
    %c0_i32_0 = arith.constant 0 : i32
    return %arg0, %c0_i32 : i32, i32
  }
  func.func @transform_1(%arg0: i32) -> (i32, i32) {
    %c0_i32 = arith.constant 0 : i32
    %c0_i32_0 = arith.constant 0 : i32
    %c0_i32_1 = arith.constant 0 : i32
    return %c0_i32, %c0_i32_0 : i32, i32
  }
  func.func @transform_2(%arg0: i32) -> (i32, i32) {
    %c0_i32 = arith.constant 0 : i32
    %c0_i32_0 = arith.constant 0 : i32
    %c0_i32_1 = arith.constant 0 : i32
    return %c0_i32, %c0_i32_0 : i32, i32
  }
  func.func @transform_3(%arg0: i32) -> (i32, i32) {
    %c0_i32 = arith.constant 0 : i32
    %c0_i32_0 = arith.constant 0 : i32
    %c0_i32_1 = arith.constant 0 : i32
    return %c0_i32, %c0_i32_0 : i32, i32
  }
  func.func @transform_4(%arg0: i32) -> (i32, i32) {
    %c0_i32 = arith.constant 0 : i32
    %c0_i32_0 = arith.constant 0 : i32
    %c0_i32_1 = arith.constant 0 : i32
    return %c0_i32, %c0_i32_0 : i32, i32
  }
  func.func @transform_5(%arg0: i32) -> (i32, i32) {
    %c0_i32 = arith.constant 0 : i32
    %c0_i32_0 = arith.constant 0 : i32
    return %arg0, %c0_i32 : i32, i32
  }
}

</mosaic_0001>

<bundles_post_ra>
// kernel: tpu_custom_call.1
= control target key start
LH: loop header
LB: loop body
LE: loop exit
PB: predicated region body
PF: predicated region fallthrough
CT: control target
= control target key end

     0   :  { %10 = vsyncpa [#allocation3], 0  ;;  %s455_s0 = inlined_call_operand.hbm [shape: f32[16,128], index: 0, kind: input, shape index: {}]   ;;  %s456_s1 = inlined_call_operand.hbm [shape: f32[1,128], index: 1, kind: input, shape index: {}]   ;;  %s457_s2 = inlined_call_operand.vmem [shape: f32[1,128], index: 2, kind: input, shape index: {}]   ;;  %s458_s3 = inlined_call_operand.hbm [shape: bf16[128,128], index: 3, kind: input, shape index: {}]   ;;  %s459_s4 = inlined_call_operand.vmem [shape: f32[1,128], index: 4, kind: input, shape index: {}]   ;;  %s460_s5 = inlined_call_operand.hbm [shape: f32[16,128], index: 5, kind: output, shape index: {}]  }
   0x1   :  { %11 = vsyncpa [#allocation6], 0  ;;  %s31_s20 = sshll.u32 %s456_s1, 4  ;;  %s32_s20 = int_to_ptr.hbm [resolvable:$true] %s31_s20 }
   0x2   :  { %12 = vsyncpa [#allocation4], 0  ;;  %s392_s21 = smov [#allocation5]   ;;  %s17_s25 = sshll.u32 %s455_s0, 4  ;;  %s18_s25 = int_to_ptr.hbm [resolvable:$true] %s17_s25 }
   0x3   :  { %s33_s22 = sshll.u32 %s392_s21, 4  ;;  %s393_s26 = smov [#allocation2]   ;;  %s34_s22 = int_to_ptr.vmem [resolvable:$true] %s33_s22 }
   0x4   :  { %36 = dma.hbm_to_vmem [thread:$0]  %s32_s20, 16, %s34_s22, [#allocation6]  }
   0x5   :  { %s19_s27 = sshll.u32 %s393_s26, 4  ;;  %s394_s28 = smov 128   ;;  %s20_s27 = int_to_ptr.vmem [resolvable:$true] %s19_s27 }
   0x6   :  { %s395_s29 = smov 8   ;;  %s43_s6 = sshll.u32 %s458_s3, 4  ;;  %s44_s6 = int_to_ptr.hbm [resolvable:$true] %s43_s6 }
   0x7   :  { %25 = dma.hbm_to_vmem [thread:$0]  %s18_s25, 256, %s20_s27, [#allocation3], %s394_s28, %s394_s28, %s395_s29  }
   0x8   :  { %s396_s7 = smov [#allocation7]   ;;  %s397_s0 = smov 64  }
   0x9   :  { %s45_s8 = sshll.u32 %s396_s7, 4  ;;  %s398_s9 = smov 4   ;;  %s46_s8 = int_to_ptr.vmem [resolvable:$true] %s45_s8 }
   0xa   :  { %51 = dma.hbm_to_vmem [thread:$0]  %s44_s6, 1024, %s46_s8, [#allocation6], %s397_s0, %s397_s0, %s398_s9  }
   0xb   :  { %386 = dma.done.wait [#allocation3], 256  }
   0xc   :  { %387 = vsyncadd [#allocation3], 4294967040 }
   0xd   :  { %388 = dma.done.wait [#allocation6], 1040  }
   0xe   :  { %389 = vsyncadd [#allocation6], 4294966256  ;;  %v66_v0 = vld [vmem:[#allocation2] sm:$0xff]  ;;  %v67_v1 = vld [vmem:[#allocation2 + $0x8] sm:$0xff]  ;;  %v399_v2 = vmov 128.0   ;;  %s400_s13 = smov [#allocation8]  }
   0xf   :  { %68 = vadd.xlane.f32.xlu0 %v66_v0  ;;  %284 = vrcp.f32 %v399_v2  ;;  %v271_v17 = vld [vmem:[#allocation7 + $0x38] sm:$0xff]  ;;  %v270_v18 = vld [vmem:[#allocation7 + $0x30] sm:$0xff]  ;;  %v269_v19 = vld [vmem:[#allocation7 + $0x28] sm:$0xff]  ;;  %s216_s14 = sshll.u32 %s400_s13, 4  ;;  %s218_s17 = sshll.u32 %s460_s5, 4  ;;  %s217_s14 = int_to_ptr.vmem [resolvable:$true] %s216_s14  ;;  %s219_s17 = int_to_ptr.hbm [resolvable:$true] %s218_s17 }
  0x10   :  { %196 = vmatpush.bf16.msra.mxu0 %v271_v17  ;;  %v268_v20 = vld [vmem:[#allocation7 + $0x20] sm:$0xff]  ;;  %v267_v21 = vld [vmem:[#allocation7 + $0x18] sm:$0xff]  ;;  %v266_v22 = vld [vmem:[#allocation7 + $0x10] sm:$0xff] }
  0x11   :  { %v265_v23 = vld [vmem:[#allocation7 + $0x8] sm:$0xff]  ;;  %v264_v25 = vld [vmem:[#allocation7] sm:$0xff]  ;;  %v281_v44 = vld [vmem:[#allocation5] ss:$0 sm:$0xff] }
  0x12   :  { %v282_v49 = vld [vmem:[%s457_s2] ss:$0 sm:$0xff] }
  0x13   :  { %v283_v54 = vld [vmem:[%s459_s4] ss:$0 sm:$0xff] }
  0x14   :  { %197 = vmatpush.bf16.msra.mxu0 %v270_v18 }
  0x15   :  { %v285_v3 = vpop.eup %284 }
  0x16   :  { %v73_v4 = vmul.f32 128.0, %v285_v3  ;;  %vm77_vm0 = vweird.f32 %v285_v3 }
  0x17   :  { %70 = vadd.xlane.f32.xlu0 %v67_v1 }
  0x18   :  { %v74_v5 = vsub.f32 1.0, %v73_v4  ;;  %198 = vmatpush.bf16.msra.mxu0 %v269_v19 }
  0x1a   :  { %v75_v6 = vmul.f32 %v285_v3, %v74_v5 }
  0x1c   :  { %v76_v7 = vadd.f32 %v285_v3, %v75_v6  ;;  %199 = vmatpush.bf16.msra.mxu0 %v268_v20 }
  0x1e   :  { %v78_v8 = vsel %vm77_vm0, %v285_v3, %v76_v7 }
  0x20   :  { %200 = vmatpush.bf16.msra.mxu0 %v267_v21 }
  0x24   :  { %201 = vmatpush.bf16.msra.mxu0 %v266_v22 }
  0x28   :  { %202 = vmatpush.bf16.msra.mxu0 %v265_v23 }
  0x2c   :  { %203 = vmatpush.bf16.msra.mxu0 %v264_v25 }
  0x82   :  { %v69_v9 = vpop.xlane.xlu0 %68 }
  0x83   :  { %v79_v10 = vmul.f32 %v78_v8, %v69_v9 }
  0x85   :  { %v81_v11 = vsub.f32 %v66_v0, %v79_v10 }
  0x87   :  { %v83_v12 = vmul.f32 %v81_v11, %v81_v11 }
  0x89   :  { %85 = vadd.xlane.f32.xlu1 %v83_v12 }
  0x8a   :  { %v71_v13 = vpop.xlane.xlu0 %70 }
  0x8b   :  { %v80_v14 = vmul.f32 %v78_v8, %v71_v13 }
  0x8d   :  { %v82_v15 = vsub.f32 %v67_v1, %v80_v14 }
  0x8f   :  { %v84_v16 = vmul.f32 %v82_v15, %v82_v15 }
  0x91   :  { %87 = vadd.xlane.f32.xlu1 %v84_v16 }
  0xfc   :  { %v86_v24 = vpop.xlane.xlu1 %85 }
  0xfd   :  { %v89_v26 = vmul.f32 %v86_v24, %v78_v8 }
  0xff   :  { %v91_v27 = vadd.f32 1e-05, %v89_v26 }
 0x101   :  { %286 = vrsqrt.f32 %v91_v27  ;;  %vm99_vm2 = vweird.f32 %v91_v27 }
 0x104   :  { %v88_v28 = vpop.xlane.xlu1 %87 }
 0x105   :  { %v90_v29 = vmul.f32 %v88_v28, %v78_v8 }
 0x107   :  { %v287_v30 = vpop.eup %286  ;;  %v92_v31 = vadd.f32 1e-05, %v90_v29 }
 0x108   :  { %v94_v32 = vmul.f32 %v287_v30, %v91_v27  ;;  %vm100_vm1 = vweird.f32 %v287_v30 }
 0x109   :  { %288 = vrsqrt.f32 %v92_v31  ;;  %vm101_vm3 = vmor %vm99_vm2, %vm100_vm1  ;;  %vm109_vm5 = vweird.f32 %v92_v31 }
 0x10a   :  { %v95_v33 = vmul.f32 %v287_v30, %v94_v32 }
 0x10c   :  { %v96_v34 = vmul.f32 0.5, %v95_v33 }
 0x10e   :  { %v97_v35 = vsub.f32 1.5, %v96_v34 }
 0x10f   :  { %v289_v36 = vpop.eup %288 }
 0x110   :  { %v98_v37 = vmul.f32 %v287_v30, %v97_v35  ;;  %v104_v38 = vmul.f32 %v289_v36, %v92_v31  ;;  %vm110_vm4 = vweird.f32 %v289_v36 }
 0x111   :  { %vm111_vm6 = vmor %vm109_vm5, %vm110_vm4 }
 0x112   :  { %v105_v39 = vmul.f32 %v289_v36, %v104_v38  ;;  %v102_v41 = vsel %vm101_vm3, %v287_v30, %v98_v37 }
 0x113   :  { %v113_v43 = vmul.f32 %v102_v41, %v81_v11 }
 0x114   :  { %v106_v40 = vmul.f32 0.5, %v105_v39 }
 0x115   :  { %v119_v48 = vmul.f32 %v281_v44, %v113_v43 }
 0x116   :  { %v107_v42 = vsub.f32 1.5, %v106_v40 }
 0x117   :  { %v125_v51 = vadd.f32 %v282_v49, %v119_v48 }
 0x118   :  { %v108_v45 = vmul.f32 %v289_v36, %v107_v42 }
 0x11a   :  { %v112_v46 = vsel %vm111_vm6, %v289_v36, %v108_v45 }
 0x11b   :  { %v114_v47 = vmul.f32 %v112_v46, %v82_v15 }
 0x11d   :  { %v120_v50 = vmul.f32 %v281_v44, %v114_v47 }
 0x11f   :  { %v126_v52 = vadd.f32 %v282_v49, %v120_v50 }
 0x121   :  { %v127_v53 = vpack.c.bf16 %v126_v52, %v125_v51 }
 0x123   :  { %204 = vmatmul.bf16.vlgmr.msra.gmra.mxu0 %v127_v53 }
 0x1a0   :  { %v205_v55 = vpop.f32.mrf.mxu0 }
 0x1a1   :  { %v206_v56 = vadd.f32 %v283_v54, %v205_v55 }
 0x1a3   :  { %210 = vst [vmem:[#allocation8] sm:$0xff] %v206_v56 }
 0x1a8   :  { %v207_v57 = vpop.f32.mrf.mxu0 }
 0x1a9   :  { %v208_v58 = vadd.f32 %v283_v54, %v207_v57 }
 0x1ab   :  { %211 = vst [vmem:[#allocation8 + $0x8] sm:$0xff] %v208_v58 }
 0x1ac   :  { %224 = dma.vmem_to_hbm [thread:$0]  %s217_s14, 256, %s219_s17, [#allocation4], %s394_s28, %s394_s28, %s395_s29  }
 0x1ad   :  { %390 = dma.done.wait [#allocation4], 256  }
 0x1ae   :  { %391 = vsyncadd [#allocation4], 4294967040 }
 0x1af   :  { %229 = vsyncpa [#allocation3], 1 }
 0x1b0   :  { %230 = vsyncpa [#allocation6], 1 }
 0x1b1   :  { %231 = vsyncpa [#allocation4], 1 }

</bundles_post_ra>
